<compile_context>
chip_gen: v6e
topology: v6e:2x2x1
jax: 0.10.0
libtpu: 0.0.40
codegen_flags: <defaults>
</compile_context>

<pallas_src>
import functools

import jax
import jax.numpy as jnp
import numpy as np
from jax import lax
from jax.experimental import pallas as pl
from jax.experimental.pallas import tpu as pltpu
from jax.scipy.linalg import solve_triangular

_NSIDE = 3                              # packed side rows: [y, 1, K_nn_diag]
_DN = (((1,), (1,)), ((), ()))          # contract last axis of both operands: A @ B^T


# -----------------------------------------------------------------------------
# Pallas kernel: per-(split, batch) reductions over the N axis.
#   gram  (M, M)   = K_mn @ K_mn^T
#   cross (M, 3)   : col 0 = K_mn @ y, col 1 = K_mn @ 1 (row sums)
#   scal  (3, 3)   : [0,0]=sum y^2, [0,1]=sum y, [1,2]=sum K_nn_diag
# -----------------------------------------------------------------------------
def _gp_reduction_kernel(kmn_ref, side_ref, gram_ref, cross_ref, scal_ref, *,
                         n_total, tile_n, tiles_per_split, need_mask):
    nt = pl.program_id(2)

    @pl.when(nt == 0)
    def _():
        gram_ref[...] = jnp.zeros_like(gram_ref)
        cross_ref[...] = jnp.zeros_like(cross_ref)
        scal_ref[...] = jnp.zeros_like(scal_ref)

    kmn = kmn_ref[0]      # (M, TN)
    side = side_ref[0]    # (3, TN): rows = [y, 1, K_nn_diag]

    if need_mask:
        # Ragged N: zero the columns past N of the partial tile instead of
        # materializing a padded copy of K_mn / side in HBM (the out-of-bounds
        # part of an edge block is unspecified data).
        t = pl.program_id(0) * tiles_per_split + nt
        valid = n_total - t * tile_n

        def _mask(x):
            col = lax.broadcasted_iota(jnp.int32, x.shape, 1)
            return jnp.where(col < valid, x, jnp.zeros_like(x))

        kmn = _mask(kmn)
        side = _mask(side)

    # Three MXU contractions over the tile's N axis; no transpose materialized.
    gram_ref[0, 0] += lax.dot_general(kmn, kmn, _DN,
                                      preferred_element_type=jnp.float32)
    cross_ref[0, 0] += lax.dot_general(kmn, side, _DN,
                                       preferred_element_type=jnp.float32)
    scal_ref[0, 0] += lax.dot_general(side, side, _DN,
                                      preferred_element_type=jnp.float32)


def gp_reductions(K_mn, side, n, *, tile_n, n_split):
    B, M, _ = K_mn.shape
    tiles = -(-n // (tile_n * n_split))
    need_mask = tiles * tile_n * n_split != n

    kernel = functools.partial(
        _gp_reduction_kernel, n_total=n, tile_n=tile_n,
        tiles_per_split=tiles, need_mask=need_mask)

    def in_map(s, b, t):
        return (b, 0, s * tiles + t)

    def out_map(s, b, t):
        return (s, b, 0, 0)

    gram, cross, scal = pl.pallas_call(
        kernel,
        out_shape=(
            jax.ShapeDtypeStruct((n_split, B, M, M), jnp.float32),
            jax.ShapeDtypeStruct((n_split, B, M, _NSIDE), jnp.float32),
            jax.ShapeDtypeStruct((n_split, B, _NSIDE, _NSIDE), jnp.float32),
        ),
        grid_spec=pltpu.PrefetchScalarGridSpec(
            num_scalar_prefetch=0,
            grid=(n_split, B, tiles),
            in_specs=[
                # Enable pipeline_mode=pl.Buffered(3) here only if a trace shows
                # exposed DMA after the tile_n increase.
                pl.BlockSpec((1, M, tile_n), in_map),
                pl.BlockSpec((1, _NSIDE, tile_n), in_map),
            ],
            out_specs=[
                pl.BlockSpec((1, 1, M, M), out_map),
                pl.BlockSpec((1, 1, M, _NSIDE), out_map),
                pl.BlockSpec((1, 1, _NSIDE, _NSIDE), out_map),
            ],
        ),
        compiler_params=pltpu.CompilerParams(
            dimension_semantics=("parallel", "parallel", "arbitrary")),
    )(K_mn, side)
    # Fold the (usually size-1) N-split axis; tiny (M,M) adds in plain JAX.
    return gram.sum(axis=0), cross.sum(axis=0), scal.sum(axis=0)


# -----------------------------------------------------------------------------
# JAX glue: small M x M linear algebra + scalar arithmetic.
# -----------------------------------------------------------------------------
def _tri_solve_lower(L, b):
    return solve_triangular(L, b, lower=True)


def _cho_solve_lower(L, b):
    z = solve_triangular(L, b, lower=True)
    return solve_triangular(L, z, lower=True, trans=1)


def _round_up(x, m):
    return (x + m - 1) // m * m


@functools.partial(jax.jit, static_argnames=("tile_n", "n_split"))
def gp_vfe_forward(K_mm, K_mn, K_nn_diag, y, mean, var, *, tile_n=None, n_split=1):
    # TODO(synk): cholesky_ex / solve_triangular / cholesky_solve (sequential
    # M x M factorizations) have no clean Pallas TPU equivalent; kept in JAX
    # glue, and torch's cholesky_ex `info` is approximated by NaN detection.
    del mean  # the reference forward recomputes the optimal mean; input unused
    B, M, N = K_mn.shape
    dtype = K_mn.dtype

    if tile_n is None:
        # Large N tiles amortize the ~0.35us/step grid overhead.  Cap so the
        # double-buffered input blocks 2*(M+3)*tile_n*itemsize stay ~12 MiB,
        # under even v5e's 16 MiB scoped-VMEM default (32 MiB on v6e/v7x), so
        # no vmem_limit override / pipelining downgrade on any generation.
        itemsize = jnp.dtype(dtype).itemsize
        vmem_cap = max(128, (12 * 2 ** 20) // (2 * (M + _NSIDE) * itemsize)
                       // 128 * 128)
        tile_n = max(128, min(8192, vmem_cap,
                              _round_up(-(-N // n_split), 128)))

    # Packed side input (exactly 3 rows: [y, 1, K_nn_diag]) -> one small extra
    # DMA stream.  If K_mn arrives in bf16 upstream, consider keeping the y row
    # in f32 (tiny stream) to protect sum(y^2); here side follows K_mn's dtype.
    y_row = y.reshape(B, 1, N).astype(dtype)
    knn_row = K_nn_diag.reshape(B, 1, N).astype(dtype)
    ones_row = jnp.ones((B, 1, N), dtype)
    side = jnp.concatenate([y_row, ones_row, knn_row], axis=1)

    gram, cross, scal = gp_reductions(K_mn, side, N, tile_n=tile_n,
                                      n_split=n_split)

    ysum = scal[:, 0, 1]        # (B,) = sum y
    yy = scal[:, 0, 0]          # (B,) = sum y^2
    knn_sum = scal[:, 1, 2]     # (B,) = sum K_nn_diag

    var = jnp.asarray(var, jnp.float32)
    var_inv = 1.0 / var
    Nf = jnp.float32(N)
    eye = jnp.eye(M, dtype=jnp.float32)

    K_mm_j = K_mm.astype(jnp.float32) + 1e-4 * eye[None]
    L_mm = jnp.linalg.cholesky(K_mm_j)
    A = var * K_mm_j + gram
    L_A = jnp.linalg.cholesky(A)
    info = (jnp.any(jnp.isnan(L_mm), axis=(1, 2)) |
            jnp.any(jnp.isnan(L_A), axis=(1, 2))).astype(jnp.int32)

    # ---- solve_optimal_mean: single 2-column triangular solve ---------------
    tri = jax.vmap(_tri_solve_lower)
    L_inv_kc = tri(L_A, cross[:, :, 0:2])            # (B,M,2): [L^-1 Ky, L^-1 Ksum]
    L_inv_ky = L_inv_kc[:, :, 0]                     # (B, M)
    L_inv_ks = L_inv_kc[:, :, 1]                     # (B, M)
    A2T_A2 = jnp.sum(L_inv_ks * L_inv_ks, axis=1)    # (B,)
    A2T_b2 = jnp.sum(L_inv_ks * L_inv_ky, axis=1)    # (B,)
    mean2 = (ysum - A2T_b2) / (Nf - A2T_A2)          # (B,)

    # ---- data term (sufficient statistics; reuses the same solves) ----------
    yc_sq_mean = (yy - 2.0 * mean2 * ysum + Nf * mean2 * mean2) / Nf
    # quad = (K_mn yc)^T A^-1 (K_mn yc) = || L_A^-1 K_mn yc ||^2
    L_inv_kyc = L_inv_ky - mean2[:, None] * L_inv_ks
    quad = jnp.sum(L_inv_kyc * L_inv_kyc, axis=1)
    data_term = 0.5 * var_inv * (yc_sq_mean - quad / Nf)

    # ---- complexity term -----------------------------------------------------
    logdet_A = 2.0 * jnp.sum(jnp.log(jnp.diagonal(L_A, axis1=1, axis2=2)), axis=1)
    logdet_mm = 2.0 * jnp.sum(jnp.log(jnp.diagonal(L_mm, axis1=1, axis2=2)), axis=1)
    complexity_term = (0.5 / Nf) * ((Nf - M) * jnp.log(var) + logdet_A - logdet_mm)

    # ---- constant term -------------------------------------------------------
    constant_term = jnp.float32(0.5 * np.log(2.0 * np.pi))

    # ---- trace term ----------------------------------------------------------
    # sum(K_mn * K_mm^{-1} K_mn) == sum(K_mm^{-1} * Gram)   (both symmetric)
    cho = jax.vmap(_cho_solve_lower)
    K_mm_inv = cho(L_mm, jnp.broadcast_to(eye, (B, M, M)))
    trace_inner = jnp.sum(K_mm_inv * gram, axis=(1, 2))
    trace_term = 0.5 * var_inv * (knn_sum / Nf - trace_inner / Nf)

    nlml = data_term + complexity_term + constant_term + trace_term
    return nlml, info


# -----------------------------------------------------------------------------
# Pure-JAX reference (mirrors the PyTorch code literally) for self-check.
# -----------------------------------------------------------------------------
def gp_vfe_reference(K_mm, K_mn, K_nn_diag, y, mean, var):
    del mean
    B, M, N = K_mn.shape
    var = jnp.asarray(var, jnp.float32)
    var_inv = 1.0 / var
    eye = jnp.eye(M, dtype=jnp.float32)
    K_mm_j = K_mm + 1e-4 * eye[None]
    L_mm = jnp.linalg.cholesky(K_mm_j)
    A = var * K_mm_j + K_mn @ jnp.swapaxes(K_mn, -1, -2)
    L_A = jnp.linalg.cholesky(A)
    info = (jnp.any(jnp.isnan(L_mm), axis=(1, 2)) |
            jnp.any(jnp.isnan(L_A), axis=(1, 2))).astype(jnp.int32)

    tri = jax.vmap(_tri_solve_lower)
    cho = jax.vmap(_cho_solve_lower)

    K_mn_y = K_mn @ y
    L_inv_Kmn_y = tri(L_A, K_mn_y)
    Kmn_sum = jnp.sum(K_mn, axis=2, keepdims=True)
    L_inv_Kmn_sum = tri(L_A, Kmn_sum)
    A1T_b1 = jnp.sum(y, axis=1, keepdims=True)
    tmp = jnp.swapaxes(L_inv_Kmn_sum, 1, 2)
    A2T_A2 = tmp @ L_inv_Kmn_sum
    A2T_b2 = tmp @ L_inv_Kmn_y
    mean2 = (A1T_b1 - A2T_b2) / (jnp.float32(N) - A2T_A2)

    yc = y - mean2
    K_mn_yc = K_mn @ yc
    data = 0.5 * var_inv * (
        jnp.mean(yc * yc, axis=1)[:, 0]
        - (1.0 / N) * (jnp.swapaxes(K_mn_yc, 1, 2) @ cho(L_A, K_mn_yc))[:, 0, 0])
    logdet_A = 2.0 * jnp.sum(jnp.log(jnp.diagonal(L_A, axis1=1, axis2=2)), axis=1)
    logdet_mm = 2.0 * jnp.sum(jnp.log(jnp.diagonal(L_mm, axis1=1, axis2=2)), axis=1)
    complexity = (0.5 / N) * ((N - M) * jnp.log(var) + logdet_A - logdet_mm)
    constant = jnp.float32(0.5 * np.log(2.0 * np.pi))
    trace = 0.5 * var_inv * (
        jnp.mean(K_nn_diag, axis=1)
        - jnp.sum(K_mn / N * cho(L_mm, K_mn), axis=(1, 2)))
    return data + complexity + constant + trace, info


# -----------------------------------------------------------------------------
def _rbf(a, b):
    # a: (B, P, D), b: (B, Q, D)  ->  (B, P, Q)
    d2 = (jnp.sum(a * a, axis=-1)[:, :, None]
          + jnp.sum(b * b, axis=-1)[:, None, :]
          - 2.0 * (a @ jnp.swapaxes(b, -1, -2)))
    return jnp.exp(-0.5 * d2 / a.shape[-1]).astype(jnp.float32)


def _make_inputs(key, B, M, N, D):
    k1, k2, k3 = jax.random.split(key, 3)
    Z = jax.random.normal(k1, (B, M, D), dtype=jnp.float32)     # inducing points
    X = jax.random.normal(k2, (B, N, D), dtype=jnp.float32)     # data points
    K_mm = _rbf(Z, Z)                           # (B, M, M), PSD
    K_mn = _rbf(Z, X)                           # (B, M, N)
    K_nn_diag = jnp.ones((B, N), jnp.float32)   # rbf(x, x) = 1
    y = jax.random.normal(k3, (B, N, 1), dtype=jnp.float32)
    mean = jnp.zeros((B, 1, 1), jnp.float32)    # unused by forward
    var = jnp.float32(0.1)
    return K_mm, K_mn, K_nn_diag, y, mean, var


if __name__ == "__main__":
    key = jax.random.PRNGKey(0)
    k_a, k_b = jax.random.split(key)

    # Case 1: N divisible by the tile (no in-kernel masking), n_split=1.
    args_a = _make_inputs(k_a, B=2, M=8, N=2048, D=16)
    nlml_a, info_a = gp_vfe_forward(*args_a)
    jax.block_until_ready((nlml_a, info_a))
    nlml_a_ref, info_a_ref = gp_vfe_reference(*args_a)
    np.testing.assert_allclose(np.asarray(nlml_a), np.asarray(nlml_a_ref),
                               rtol=1e-2, atol=1e-2)
    assert np.array_equal(np.asarray(info_a), np.asarray(info_a_ref))

    # Case 2: ragged N (exercises the in-kernel tail mask instead of jnp.pad)
    # with n_split=2 (the v7x two-TensorCore config; also valid on v5e/v6e).
    args_b = _make_inputs(k_b, B=1, M=8, N=1000, D=16)
    nlml_b, info_b = gp_vfe_forward(*args_b, n_split=2)
    jax.block_until_ready((nlml_b, info_b))
    nlml_b_ref, info_b_ref = gp_vfe_reference(*args_b)
    np.testing.assert_allclose(np.asarray(nlml_b), np.asarray(nlml_b_ref),
                               rtol=1e-2, atol=1e-2)
    assert np.array_equal(np.asarray(info_b), np.asarray(info_b_ref))

    print("KERNEL_OK")
</pallas_src>

<mosaic_0001>
module attributes {stable_mosaic.version = 11 : i64} {
  func.func @_gp_reduction_kernel(%arg0: i32, %arg1: i32, %arg2: i32, %arg3: memref<1x8x2048xf32, #tpu.memory_space<vmem>>, %arg4: memref<1x3x2048xf32, #tpu.memory_space<vmem>>, %arg5: memref<1x1x8x8xf32, #tpu.memory_space<vmem>>, %arg6: memref<1x1x8x3xf32, #tpu.memory_space<vmem>>, %arg7: memref<1x1x3x3xf32, #tpu.memory_space<vmem>>) attributes {dimension_semantics = [#tpu.dimension_semantics<parallel>, #tpu.dimension_semantics<parallel>, #tpu.dimension_semantics<arbitrary>], iteration_bounds = array<i64: 1, 2, 1>, scalar_prefetch = 0 : i64, scratch_operands = 0 : i64, tpu.core_type = #tpu.core_type<tc>, window_params = [{transform_indices = @transform_0, window_bounds = array<i64: 1, 8, 2048>}, {transform_indices = @transform_1, window_bounds = array<i64: 1, 3, 2048>}, {transform_indices = @transform_2, window_bounds = array<i64: 1, 1, 8, 8>}, {transform_indices = @transform_3, window_bounds = array<i64: 1, 1, 8, 3>}, {transform_indices = @transform_4, window_bounds = array<i64: 1, 1, 3, 3>}]} {
    %c0_i32 = arith.constant 0 : i32
    %0 = arith.cmpi eq, %arg2, %c0_i32 : i32
    %1 = arith.extui %0 : i1 to i32
    %c0_i32_0 = arith.constant 0 : i32
    %2 = arith.cmpi ne, %1, %c0_i32_0 : i32
    scf.if %2 {
      %cst_32 = arith.constant 0.000000e+00 : f32
      %28 = vector.broadcast %cst_32 : f32 to vector<1x1x8x8xf32>
      %c0_33 = arith.constant 0 : index
      %c0_34 = arith.constant 0 : index
      %c0_35 = arith.constant 0 : index
      %c0_36 = arith.constant 0 : index
      %29 = vector.load %arg5[%c0_33, %c0_34, %c0_35, %c0_36] : memref<1x1x8x8xf32, #tpu.memory_space<vmem>>, vector<1x1x8x8xf32>
      tpu.vector_store %arg5[%c0_33, %c0_34, %c0_35, %c0_36], %28 {strides = array<i32>} : memref<1x1x8x8xf32, #tpu.memory_space<vmem>>, vector<1x1x8x8xf32>,
      %cst_37 = arith.constant 0.000000e+00 : f32
      %30 = vector.broadcast %cst_37 : f32 to vector<1x1x8x3xf32>
      %c0_38 = arith.constant 0 : index
      %c0_39 = arith.constant 0 : index
      %c0_40 = arith.constant 0 : index
      %c0_41 = arith.constant 0 : index
      %31 = vector.load %arg6[%c0_38, %c0_39, %c0_40, %c0_41] : memref<1x1x8x3xf32, #tpu.memory_space<vmem>>, vector<1x1x8x3xf32>
      tpu.vector_store %arg6[%c0_38, %c0_39, %c0_40, %c0_41], %30 {strides = array<i32>} : memref<1x1x8x3xf32, #tpu.memory_space<vmem>>, vector<1x1x8x3xf32>,
      %cst_42 = arith.constant 0.000000e+00 : f32
      %32 = vector.broadcast %cst_42 : f32 to vector<1x1x3x3xf32>
      %c0_43 = arith.constant 0 : index
      %c0_44 = arith.constant 0 : index
      %c0_45 = arith.constant 0 : index
      %c0_46 = arith.constant 0 : index
      %33 = vector.load %arg7[%c0_43, %c0_44, %c0_45, %c0_46] : memref<1x1x3x3xf32, #tpu.memory_space<vmem>>, vector<1x1x3x3xf32>
      tpu.vector_store %arg7[%c0_43, %c0_44, %c0_45, %c0_46], %32 {strides = array<i32>} : memref<1x1x3x3xf32, #tpu.memory_space<vmem>>, vector<1x1x3x3xf32>,
    } else {
    }
    %c0 = arith.constant 0 : index
    %c0_1 = arith.constant 0 : index
    %c0_2 = arith.constant 0 : index
    %3 = vector.load %arg3[%c0, %c0_1, %c0_2] : memref<1x8x2048xf32, #tpu.memory_space<vmem>>, vector<1x8x2048xf32>
    %4 = vector.shape_cast %3 : vector<1x8x2048xf32> to vector<8x2048xf32>
    %c0_3 = arith.constant 0 : index
    %c0_4 = arith.constant 0 : index
    %c0_5 = arith.constant 0 : index
    %5 = vector.load %arg4[%c0_3, %c0_4, %c0_5] : memref<1x3x2048xf32, #tpu.memory_space<vmem>>, vector<1x3x2048xf32>
    %6 = vector.shape_cast %5 : vector<1x3x2048xf32> to vector<3x2048xf32>
    %c0_6 = arith.constant 0 : index
    %c0_7 = arith.constant 0 : index
    %c0_8 = arith.constant 0 : index
    %c0_9 = arith.constant 0 : index
    %7 = vector.load %arg5[%c0_6, %c0_7, %c0_8, %c0_9] : memref<1x1x8x8xf32, #tpu.memory_space<vmem>>, vector<1x1x8x8xf32>
    %8 = vector.shape_cast %7 : vector<1x1x8x8xf32> to vector<8x8xf32>
    %cst = arith.constant dense<0.000000e+00> : vector<8x8xf32>
    %9 = tpu.matmul %4, %4, %cst {dimension_numbers = #tpu.dot_dimension_numbers<[1], [1], [0], [0], [0, 0, 1, 0], [], []>} : vector<8x2048xf32>, vector<8x2048xf32>, vector<8x8xf32> -> vector<8x8xf32>
    %10 = arith.addf %8, %9 : vector<8x8xf32>
    %c0_10 = arith.constant 0 : index
    %c0_11 = arith.constant 0 : index
    %c0_12 = arith.constant 0 : index
    %c0_13 = arith.constant 0 : index
    %11 = vector.load %arg5[%c0_10, %c0_11, %c0_12, %c0_13] : memref<1x1x8x8xf32, #tpu.memory_space<vmem>>, vector<1x1x8x8xf32>
    %12 = vector.shape_cast %11 : vector<1x1x8x8xf32> to vector<8x8xf32>
    %13 = vector.shape_cast %10 : vector<8x8xf32> to vector<1x1x8x8xf32>
    tpu.vector_store %arg5[%c0_10, %c0_11, %c0_12, %c0_13], %13 {strides = array<i32>} : memref<1x1x8x8xf32, #tpu.memory_space<vmem>>, vector<1x1x8x8xf32>,
    %c0_14 = arith.constant 0 : index
    %c0_15 = arith.constant 0 : index
    %c0_16 = arith.constant 0 : index
    %c0_17 = arith.constant 0 : index
    %14 = vector.load %arg6[%c0_14, %c0_15, %c0_16, %c0_17] : memref<1x1x8x3xf32, #tpu.memory_space<vmem>>, vector<1x1x8x3xf32>
    %15 = vector.shape_cast %14 : vector<1x1x8x3xf32> to vector<8x3xf32>
    %cst_18 = arith.constant dense<0.000000e+00> : vector<8x3xf32>
    %16 = tpu.matmul %4, %6, %cst_18 {dimension_numbers = #tpu.dot_dimension_numbers<[1], [1], [0], [0], [0, 0, 1, 0], [], []>} : vector<8x2048xf32>, vector<3x2048xf32>, vector<8x3xf32> -> vector<8x3xf32>
    %17 = arith.addf %15, %16 : vector<8x3xf32>
    %c0_19 = arith.constant 0 : index
    %c0_20 = arith.constant 0 : index
    %c0_21 = arith.constant 0 : index
    %c0_22 = arith.constant 0 : index
    %18 = vector.load %arg6[%c0_19, %c0_20, %c0_21, %c0_22] : memref<1x1x8x3xf32, #tpu.memory_space<vmem>>, vector<1x1x8x3xf32>
    %19 = vector.shape_cast %18 : vector<1x1x8x3xf32> to vector<8x3xf32>
    %20 = vector.shape_cast %17 : vector<8x3xf32> to vector<1x1x8x3xf32>
    tpu.vector_store %arg6[%c0_19, %c0_20, %c0_21, %c0_22], %20 {strides = array<i32>} : memref<1x1x8x3xf32, #tpu.memory_space<vmem>>, vector<1x1x8x3xf32>,
    %c0_23 = arith.constant 0 : index
    %c0_24 = arith.constant 0 : index
    %c0_25 = arith.constant 0 : index
    %c0_26 = arith.constant 0 : index
    %21 = vector.load %arg7[%c0_23, %c0_24, %c0_25, %c0_26] : memref<1x1x3x3xf32, #tpu.memory_space<vmem>>, vector<1x1x3x3xf32>
    %22 = vector.shape_cast %21 : vector<1x1x3x3xf32> to vector<3x3xf32>
    %cst_27 = arith.constant dense<0.000000e+00> : vector<3x3xf32>
    %23 = tpu.matmul %6, %6, %cst_27 {dimension_numbers = #tpu.dot_dimension_numbers<[1], [1], [0], [0], [0, 0, 1, 0], [], []>} : vector<3x2048xf32>, vector<3x2048xf32>, vector<3x3xf32> -> vector<3x3xf32>
    %24 = arith.addf %22, %23 : vector<3x3xf32>
    %c0_28 = arith.constant 0 : index
    %c0_29 = arith.constant 0 : index
    %c0_30 = arith.constant 0 : index
    %c0_31 = arith.constant 0 : index
    %25 = vector.load %arg7[%c0_28, %c0_29, %c0_30, %c0_31] : memref<1x1x3x3xf32, #tpu.memory_space<vmem>>, vector<1x1x3x3xf32>
    %26 = vector.shape_cast %25 : vector<1x1x3x3xf32> to vector<3x3xf32>
    %27 = vector.shape_cast %24 : vector<3x3xf32> to vector<1x1x3x3xf32>
    tpu.vector_store %arg7[%c0_28, %c0_29, %c0_30, %c0_31], %27 {strides = array<i32>} : memref<1x1x3x3xf32, #tpu.memory_space<vmem>>, vector<1x1x3x3xf32>,
    return
  }
  func.func @transform_0(%arg0: i32, %arg1: i32, %arg2: i32) -> (i32, i32, i32) {
    %c1_i32 = arith.constant 1 : i32
    %0 = arith.muli %arg0, %c1_i32 : i32
    %1 = arith.addi %0, %arg2 : i32
    %c0_i32 = arith.constant 0 : i32
    %c0_i32_0 = arith.constant 0 : i32
    return %arg1, %c0_i32, %1 : i32, i32, i32
  }
  func.func @transform_1(%arg0: i32, %arg1: i32, %arg2: i32) -> (i32, i32, i32) {
    %c1_i32 = arith.constant 1 : i32
    %0 = arith.muli %arg0, %c1_i32 : i32
    %1 = arith.addi %0, %arg2 : i32
    %c0_i32 = arith.constant 0 : i32
    %c0_i32_0 = arith.constant 0 : i32
    return %arg1, %c0_i32, %1 : i32, i32, i32
  }
  func.func @transform_2(%arg0: i32, %arg1: i32, %arg2: i32) -> (i32, i32, i32, i32) {
    %c0_i32 = arith.constant 0 : i32
    %c0_i32_0 = arith.constant 0 : i32
    %c0_i32_1 = arith.constant 0 : i32
    return %arg0, %arg1, %c0_i32, %c0_i32_0 : i32, i32, i32, i32
  }
  func.func @transform_3(%arg0: i32, %arg1: i32, %arg2: i32) -> (i32, i32, i32, i32) {
    %c0_i32 = arith.constant 0 : i32
    %c0_i32_0 = arith.constant 0 : i32
    %c0_i32_1 = arith.constant 0 : i32
    return %arg0, %arg1, %c0_i32, %c0_i32_0 : i32, i32, i32, i32
  }
  func.func @transform_4(%arg0: i32, %arg1: i32, %arg2: i32) -> (i32, i32, i32, i32) {
    %c0_i32 = arith.constant 0 : i32
    %c0_i32_0 = arith.constant 0 : i32
    %c0_i32_1 = arith.constant 0 : i32
    return %arg0, %arg1, %c0_i32, %c0_i32_0 : i32, i32, i32, i32
  }
}

</mosaic_0001>

<bundles_post_ra>
// kernel: custom-call.16
= control target key start
LH: loop header
LB: loop body
LE: loop exit
PB: predicated region body
PF: predicated region fallthrough
CT: control target
= control target key end

     0   :  { %s471_s6 = smov 0   ;;  %s473_s7 = smov 0   ;;  %s551_s0 = inlined_call_operand.vmem [shape: f32[2,8,8], index: 0, kind: input, shape index: {}]   ;;  %s552_s1 = inlined_call_operand.vmem [shape: f32[2,8,8], index: 1, kind: output, shape index: {}]  }
   0x1   :  { %s475_s8 = smov 0  }
   0x2 LB: > { %s369_s9 = sadd.s32 4294967295, %s458_s8   ;;  %s26_s10 = sadd.s32 1, %s454_s7  ;;  %s458_s8 = sphi %s475_s8, %s7_s8   ;;  %s454_s7 = sphi %s473_s7, %s554_s7   ;;  %s450_s6 = sphi %s471_s6, %s553_s6  }
   0x3   : > { %p28_p0 = scmp.ge.s32.totalorder %s26_s10, 2  ;;  %p371_p1 = scmp.ge.s32.totalorder %s458_s8, 2 }
   0x4   : > { %s42_s11 = sand.u32 (!%p371_p1), 1, %s458_s8   ;;  %s373_s12 = sshll.u32 (!%p371_p1), %s454_s7, 3 }
   0x5   : > { %s556_s10 = smov (%p28_p0, %s26_s10), 0  ;;  %40 = sbr.rel (%p371_p1) target bundleno = 12 (0xc), region = 16 }
   0x6   : > { %s372_s13 = sshll.u32 (!%p371_p1), %s42_s11, 3  ;;  %s48_s16 = scalar_lea.vmem (!%p371_p1), %s551_s0, %s373_s12 }
   0x7   : > { %s44_s17 = scalar_lea.vmem (!%p371_p1), [#allocation0], %s372_s13 }
   0xa   : > { %v77_v0 = vld [vmem:[%s48_s16] sm:$0xff] }
   0xb   : > { %78 = vst [vmem:[%s44_s17] sm:$0xff] %v77_v0 }
   0xc PF: > { %p374_p2 = scmp.ge.s32.totalorder %s458_s8, 1  ;;  %p83_p3 = scmp.lt.s32.totalorder %s458_s8, 3 }
   0xe   : > { %p84_p4 = pnand %p374_p2, %p83_p3 }
   0xf   : > { %s90_s18 = sand.u32 (!%p84_p4), 1, %s369_s9   ;;  %s392_s22 = sshll.u32 (!%p84_p4), %s450_s6, 3 }
  0x10   : > { %87 = sbr.rel (%p84_p4) target bundleno = 1373 (0x55d), region = 54  ;;  %s375_s19 = sshll.u32 (!%p84_p4), %s90_s18, 3 }
  0x11   : > { %s498_s20 = scalar_lea.vmem (!%p84_p4), [#allocation1], %s375_s19  ;;  %s502_s21 = scalar_lea.vmem (!%p84_p4), [#allocation0], %s375_s19 }
  0x12   : > { %s281_s25 = scalar_lea.vmem (!%p84_p4), %s552_s1, %s392_s22 }
  0x15   : > { %v460_v1 = vmov 0.0   ;;  %v104_v5 = vld [vmem:[%s502_s21] ss:$0 sm:$0xff]  ;;  %vm102_vm0 = vcmask 7168   ;;  %v378_v17 = vld [vmem:[%s502_s21 + $0x1] ss:$0 sm:$0xff] }
  0x16   : > { %101 = vst [vmem:[%s498_s20] sm:$0xff] %v460_v1  ;;  %v506_v9 = vld [vmem:[%s502_s21] sm:$0xff]  ;;  %vm120_vm1 = vcmask 15368   ;;  %vm137_vm2 = vcmask 1047553   ;;  %vm142_vm4 = vcmask 23568   ;;  %vm159_vm5 = vcmask 1047554  }
  0x17   : > { %vm138_vm3 = vmand %vm120_vm1, %vm137_vm2  ;;  %v380_v29 = vld [vmem:[%s502_s21 + $0x2] ss:$0 sm:$0xff]  ;;  %v382_v41 = vld [vmem:[%s502_s21 + $0x3] ss:$0 sm:$0xff]  ;;  %vm164_vm7 = vcmask 31768   ;;  %vm181_vm8 = vcmask 1047555  }
  0x18   : > { %vm160_vm6 = vmand %vm142_vm4, %vm159_vm5  ;;  %v384_v53 = vld [vmem:[%s502_s21 + $0x4] ss:$0 sm:$0xff]  ;;  %vm186_vm10 = vcmask 39968   ;;  %vm203_vm11 = vcmask 1047556   ;;  %v386_v1 = vld [vmem:[%s502_s21 + $0x5] ss:$0 sm:$0xff] }
  0x19   : > { %vm182_vm9 = vmand %vm164_vm7, %vm181_vm8  ;;  %vm208_vm13 = vcmask 48168   ;;  %vm225_vm14 = vcmask 1047557   ;;  %vm247_vm1 = vcmask 1047558   ;;  %vm269_vm4 = vcmask 1047559  }
  0x1a   : > { %vm204_vm12 = vmand %vm186_vm10, %vm203_vm11 }
  0x1b   : > { %vm226_vm15 = vmand %vm208_vm13, %vm225_vm14 }
  0x1d   : > { %v103_v2 = vld [vmem:[%s498_s20] ss:$0 sm:$0xff] }
  0x1e   : > { %v105_v3 = vmul.f32 %v103_v2, %v103_v2  ;;  %v112_v4 = vmul.f32 0.0, %v103_v2 }
  0x20   : > { %106 = vadd.xlane.f32.xlu0 %v105_v3 }
  0x24   : > { %113 = vadd.xlane.f32.xlu0 %v112_v4 }
  0xa9   : > { %v107_v6 = vpop.xlane.xlu0 %106 }
  0xaa   : > { %v108_v7 = vsub.f32 %v104_v5, %v107_v6 }
  0xac   : > { %420 = vrsqrt.f32 %v108_v7 }
  0xad   : > { %v114_v8 = vpop.xlane.xlu0 %113 }
  0xae   : > { %v115_v10 = vsub.f32 %v506_v9, %v114_v8 }
  0xb9   : > { %v421_v11 = vpop.eup %420 }
  0xba   : > { %v116_v12 = vmul.f32 %v421_v11, %v115_v10 }
  0xbc   : > { %v117_v13 = vsel %vm102_vm0, %v116_v12, 0.0  ;;  %vm230_vm0 = vcmask 56368  }
  0xbd   : > { %119 = vst [vmem:[%s498_s20] sm:$0xff] %v117_v13  ;;  %vm248_vm2 = vmand %vm230_vm0, %vm247_vm1 }
  0xc4   : > { %v377_v14 = vld [vmem:[%s498_s20 + $0x1] ss:$0 sm:$0xff] }
  0xc5   : > { %v125_v15 = vmul.f32 %v377_v14, %v377_v14  ;;  %v132_v16 = vmul.f32 %v377_v14, %v117_v13  ;;  %v388_v14 = vld [vmem:[%s502_s21 + $0x6] ss:$0 sm:$0xff] }
  0xc7   : > { %126 = vadd.xlane.f32.xlu1 %v125_v15 }
  0xcb   : > { %133 = vadd.xlane.f32.xlu1 %v132_v16 }
 0x150   : > { %v127_v18 = vpop.xlane.xlu1 %126 }
 0x151   : > { %v128_v19 = vsub.f32 %v378_v17, %v127_v18 }
 0x153   : > { %422 = vrsqrt.f32 %v128_v19 }
 0x154   : > { %v134_v20 = vpop.xlane.xlu1 %133 }
 0x155   : > { %v135_v21 = vsub.f32 %v506_v9, %v134_v20 }
 0x160   : > { %v423_v22 = vpop.eup %422 }
 0x161   : > { %v136_v23 = vmul.f32 %v423_v22, %v135_v21 }
 0x163   : > { %v139_v24 = vsel %vm138_vm3, %v136_v23, 0.0  ;;  %vm252_vm3 = vcmask 64568  }
 0x164   : > { %v140_v25 = vadd.f32 %v139_v24, %v117_v13  ;;  %vm270_vm5 = vmand %vm252_vm3, %vm269_vm4 }
 0x166   : > { %141 = vst [vmem:[%s498_s20] sm:$0xff] %v140_v25 }
 0x16d   : > { %v379_v26 = vld [vmem:[%s498_s20 + $0x2] ss:$0 sm:$0xff] }
 0x16e   : > { %v154_v27 = vmul.f32 %v379_v26, %v140_v25  ;;  %v147_v28 = vmul.f32 %v379_v26, %v379_v26  ;;  %v390_v26 = vld [vmem:[%s502_s21 + $0x7] ss:$0 sm:$0xff] }
 0x170   : > { %155 = vadd.xlane.f32.xlu1 %v154_v27  ;;  %148 = vadd.xlane.f32.xlu0 %v147_v28 }
 0x1f9   : > { %v149_v30 = vpop.xlane.xlu0 %148  ;;  %v156_v32 = vpop.xlane.xlu1 %155 }
 0x1fa   : > { %v150_v31 = vsub.f32 %v380_v29, %v149_v30  ;;  %v157_v33 = vsub.f32 %v506_v9, %v156_v32 }
 0x1fc   : > { %424 = vrsqrt.f32 %v150_v31 }
 0x209   : > { %v425_v34 = vpop.eup %424 }
 0x20a   : > { %v158_v35 = vmul.f32 %v425_v34, %v157_v33 }
 0x20c   : > { %v161_v36 = vsel %vm160_vm6, %v158_v35, 0.0 }
 0x20d   : > { %v162_v37 = vadd.f32 %v161_v36, %v140_v25 }
 0x20f   : > { %163 = vst [vmem:[%s498_s20] sm:$0xff] %v162_v37 }
 0x216   : > { %v381_v38 = vld [vmem:[%s498_s20 + $0x3] ss:$0 sm:$0xff] }
 0x217   : > { %v176_v39 = vmul.f32 %v381_v38, %v162_v37  ;;  %v169_v40 = vmul.f32 %v381_v38, %v381_v38 }
 0x219   : > { %177 = vadd.xlane.f32.xlu1 %v176_v39  ;;  %170 = vadd.xlane.f32.xlu0 %v169_v40 }
 0x2a2   : > { %v171_v42 = vpop.xlane.xlu0 %170  ;;  %v178_v44 = vpop.xlane.xlu1 %177 }
 0x2a3   : > { %v172_v43 = vsub.f32 %v382_v41, %v171_v42  ;;  %v179_v45 = vsub.f32 %v506_v9, %v178_v44 }
 0x2a5   : > { %426 = vrsqrt.f32 %v172_v43 }
 0x2b2   : > { %v427_v46 = vpop.eup %426 }
 0x2b3   : > { %v180_v47 = vmul.f32 %v427_v46, %v179_v45 }
 0x2b5   : > { %v183_v48 = vsel %vm182_vm9, %v180_v47, 0.0 }
 0x2b6   : > { %v184_v49 = vadd.f32 %v183_v48, %v162_v37 }
 0x2b8   : > { %185 = vst [vmem:[%s498_s20] sm:$0xff] %v184_v49 }
 0x2bf   : > { %v383_v50 = vld [vmem:[%s498_s20 + $0x4] ss:$0 sm:$0xff] }
 0x2c0   : > { %v198_v51 = vmul.f32 %v383_v50, %v184_v49  ;;  %v191_v52 = vmul.f32 %v383_v50, %v383_v50 }
 0x2c2   : > { %199 = vadd.xlane.f32.xlu1 %v198_v51  ;;  %192 = vadd.xlane.f32.xlu0 %v191_v52 }
 0x34b   : > { %v193_v54 = vpop.xlane.xlu0 %192  ;;  %v200_v56 = vpop.xlane.xlu1 %199 }
 0x34c   : > { %v194_v55 = vsub.f32 %v384_v53, %v193_v54  ;;  %v201_v57 = vsub.f32 %v506_v9, %v200_v56 }
 0x34e   : > { %428 = vrsqrt.f32 %v194_v55 }
 0x35b   : > { %v429_v58 = vpop.eup %428 }
 0x35c   : > { %v202_v59 = vmul.f32 %v429_v58, %v201_v57 }
 0x35e   : > { %v205_v60 = vsel %vm204_vm12, %v202_v59, 0.0 }
 0x35f   : > { %v206_v61 = vadd.f32 %v205_v60, %v184_v49 }
 0x361   : > { %207 = vst [vmem:[%s498_s20] sm:$0xff] %v206_v61 }
 0x368   : > { %v385_v62 = vld [vmem:[%s498_s20 + $0x5] ss:$0 sm:$0xff] }
 0x369   : > { %v220_v63 = vmul.f32 %v385_v62, %v206_v61  ;;  %v213_v0 = vmul.f32 %v385_v62, %v385_v62 }
 0x36b   : > { %221 = vadd.xlane.f32.xlu1 %v220_v63  ;;  %214 = vadd.xlane.f32.xlu0 %v213_v0 }
 0x3f4   : > { %v215_v2 = vpop.xlane.xlu0 %214  ;;  %v222_v4 = vpop.xlane.xlu1 %221 }
 0x3f5   : > { %v216_v3 = vsub.f32 %v386_v1, %v215_v2  ;;  %v223_v5 = vsub.f32 %v506_v9, %v222_v4 }
 0x3f7   : > { %430 = vrsqrt.f32 %v216_v3 }
 0x404   : > { %v431_v6 = vpop.eup %430 }
 0x405   : > { %v224_v7 = vmul.f32 %v431_v6, %v223_v5 }
 0x407   : > { %v227_v8 = vsel %vm226_vm15, %v224_v7, 0.0 }
 0x408   : > { %v228_v10 = vadd.f32 %v227_v8, %v206_v61 }
 0x40a   : > { %229 = vst [vmem:[%s498_s20] sm:$0xff] %v228_v10 }
 0x411   : > { %v387_v11 = vld [vmem:[%s498_s20 + $0x6] ss:$0 sm:$0xff] }
 0x412   : > { %v242_v12 = vmul.f32 %v387_v11, %v228_v10  ;;  %v235_v13 = vmul.f32 %v387_v11, %v387_v11 }
 0x414   : > { %243 = vadd.xlane.f32.xlu1 %v242_v12  ;;  %236 = vadd.xlane.f32.xlu0 %v235_v13 }
 0x49d   : > { %v237_v15 = vpop.xlane.xlu0 %236  ;;  %v244_v17 = vpop.xlane.xlu1 %243 }
 0x49e   : > { %v238_v16 = vsub.f32 %v388_v14, %v237_v15  ;;  %v245_v18 = vsub.f32 %v506_v9, %v244_v17 }
 0x4a0   : > { %432 = vrsqrt.f32 %v238_v16 }
 0x4ad   : > { %v433_v19 = vpop.eup %432 }
 0x4ae   : > { %v246_v20 = vmul.f32 %v433_v19, %v245_v18 }
 0x4b0   : > { %v249_v21 = vsel %vm248_vm2, %v246_v20, 0.0 }
 0x4b1   : > { %v250_v22 = vadd.f32 %v249_v21, %v228_v10 }
 0x4b3   : > { %251 = vst [vmem:[%s498_s20] sm:$0xff] %v250_v22 }
 0x4ba   : > { %v389_v23 = vld [vmem:[%s498_s20 + $0x7] ss:$0 sm:$0xff] }
 0x4bb   : > { %v264_v24 = vmul.f32 %v389_v23, %v250_v22  ;;  %v257_v25 = vmul.f32 %v389_v23, %v389_v23 }
 0x4bd   : > { %265 = vadd.xlane.f32.xlu1 %v264_v24  ;;  %258 = vadd.xlane.f32.xlu0 %v257_v25 }
 0x546   : > { %v259_v27 = vpop.xlane.xlu0 %258  ;;  %v266_v29 = vpop.xlane.xlu1 %265 }
 0x547   : > { %v260_v28 = vsub.f32 %v390_v26, %v259_v27  ;;  %v267_v30 = vsub.f32 %v506_v9, %v266_v29 }
 0x549   : > { %434 = vrsqrt.f32 %v260_v28 }
 0x556   : > { %v435_v31 = vpop.eup %434 }
 0x557   : > { %v268_v32 = vmul.f32 %v435_v31, %v267_v30 }
 0x559   : > { %v271_v33 = vsel %vm270_vm5, %v268_v32, 0.0 }
 0x55a   : > { %v272_v34 = vadd.f32 %v271_v33, %v250_v22 }
 0x55c   : > { %273 = vst [vmem:[%s498_s20] sm:$0xff] %v272_v34  ;;  %311 = vst [vmem:[%s281_s25] sm:$0xff] %v272_v34 }
 0x55d PF: > { %s7_s8 = sadd.s32 1, %s458_s8   ;;  %s553_s6 = smov %s454_s7 }
 0x55e   : > { %p4_p5 = scmp.ge.s32.totalorder %s7_s8, 4   ;;  %s554_s7 = smov %s556_s10 }
 0x560   :  { %6 = sbr.rel (!%p4_p5) target bundleno = 2 (0x2), region = 132 }

// kernel: custom-call.8
= control target key start
LH: loop header
LB: loop body
LE: loop exit
PB: predicated region body
PF: predicated region fallthrough
CT: control target
= control target key end

     0   :  { %s387_s6 = smov 0   ;;  %s389_s7 = smov 0   ;;  %s445_s0 = inlined_call_operand.vmem [shape: f32[2,1,8,8], index: 0, kind: input, shape index: {}]   ;;  %s446_s1 = inlined_call_operand.vmem [shape: f32[2,1,8,8], index: 1, kind: output, shape index: {}]  }
   0x1   :  { %s391_s8 = smov 0  }
   0x2 LB: > { %s313_s9 = sadd.s32 4294967295, %s374_s8   ;;  %s33_s10 = sadd.s32 1, %s370_s7  ;;  %s374_s8 = sphi %s391_s8, %s7_s8   ;;  %s370_s7 = sphi %s389_s7, %s448_s7   ;;  %s366_s6 = sphi %s387_s6, %s447_s6  }
   0x3   : > { %p35_p0 = scmp.ge.s32.totalorder %s33_s10, 2  ;;  %p315_p1 = scmp.ge.s32.totalorder %s374_s8, 2 }
   0x4   : > { %s49_s11 = sand.u32 (!%p315_p1), 1, %s374_s8   ;;  %s317_s12 = sshll.u32 (!%p315_p1), %s370_s7, 3 }
   0x5   : > { %s450_s10 = smov (%p35_p0, %s33_s10), 0  ;;  %47 = sbr.rel (%p315_p1) target bundleno = 12 (0xc), region = 16 }
   0x6   : > { %s316_s13 = sshll.u32 (!%p315_p1), %s49_s11, 3  ;;  %s56_s16 = scalar_lea.vmem (!%p315_p1), %s445_s0, %s317_s12 }
   0x7   : > { %s51_s17 = scalar_lea.vmem (!%p315_p1), [#allocation0], %s316_s13 }
   0xa   : > { %v85_v0 = vld [vmem:[%s56_s16] sm:$0xff] }
   0xb   : > { %86 = vst [vmem:[%s51_s17] sm:$0xff] %v85_v0 }
   0xc PF: > { %p318_p2 = scmp.ge.s32.totalorder %s374_s8, 1  ;;  %p91_p3 = scmp.lt.s32.totalorder %s374_s8, 3 }
   0xe   : > { %p92_p4 = pnand %p318_p2, %p91_p3 }
  0x10   : > { %95 = sbr.rel (%p92_p4) target bundleno = 1182 (0x49e), region = 54 }
  0x15   : > { %s98_s18 = sand.u32 1, %s313_s9   ;;  %v109_v1 = vlaneseq  ;;  %v376_v10 = vmov -1.0   ;;  %s322_s21 = sshll.u32 %s366_s6, 3 }
  0x16   : > { %s319_s19 = sshll.u32 %s98_s18, 3  ;;  %s220_s24 = scalar_lea.vmem %s446_s1, %s322_s21 }
  0x17   : > { %v414_v2 = vand.u32 127, %v109_v1  ;;  %v113_v3 = vshrl.u32 %v109_v1, 7  ;;  %s100_s20 = scalar_lea.vmem [#allocation0], %s319_s19 }
  0x18   : > { %v116_v4 = vld [vmem:[%s100_s20] sm:$0xff] }
  0x19   : > { %vm111_vm0 = vcmp.lt.s32.totalorder %v414_v2, 8  ;;  %vm115_vm1 = vcmp.eq.s32.totalorder %v113_v3, %v414_v2  ;;  %vm120_vm2 = vcmp.ge.s32.totalorder %v113_v3, %v414_v2  ;;  %vm134_vm4 = vcmp.eq.s32.totalorder %v414_v2, 0 }
  0x1a   : > { %v117_v5 = vsel %vm115_vm1, %v116_v4, 0.0  ;;  %vm121_vm3 = vmand %vm120_vm2, %vm111_vm0  ;;  %vm131_vm5 = vcmp.eq.s32.totalorder %v414_v2, %v113_v3  ;;  %v135_v11 = vsel %vm134_vm4, 1.0, %v376_v10  ;;  %vm142_vm6 = vcmp.eq.s32.totalorder %v414_v2, 1 }
  0x1b   : > { %v122_v6 = vsel %vm121_vm3, %v116_v4, 0.0  ;;  %118 = vadd.xlane.f32.xlu0 %v117_v5  ;;  %v136_v12 = vsel %vm131_vm5, %v135_v11, 0.0  ;;  %vm152_vm7 = vcmp.eq.s32.totalorder %v414_v2, 2  ;;  %vm162_vm8 = vcmp.eq.s32.totalorder %v414_v2, 3 }
  0x1c   : > { %vm172_vm9 = vcmp.eq.s32.totalorder %v414_v2, 4  ;;  %vm182_vm10 = vcmp.eq.s32.totalorder %v414_v2, 5  ;;  %vm192_vm11 = vcmp.eq.s32.totalorder %v414_v2, 6  ;;  %vm202_vm12 = vcmp.eq.s32.totalorder %v414_v2, 7 }
  0xa4   : > { %v419_v7 = vpop.xlane.xlu0 %118 }
  0xa5   : > { %350 = vrcp.f32 %v419_v7  ;;  %vm209_vm13 = vweird.f32 %v419_v7 }
  0xb2   : > { %v351_v8 = vpop.eup %350 }
  0xb3   : > { %v124_v9 = vmul.f32 %v351_v8, %v122_v6 }
  0xb5   : > { %125 = vst [vmem:[#allocation2] sm:$0xff] %v124_v9 }
  0xbc   : > { %v138_v13 = vld [vmem:[#allocation2 + $0x1] ss:$0 sm:$0xff]  ;;  %v148_v16 = vld [vmem:[#allocation2 + $0x2] ss:$0 sm:$0xff]  ;;  %v158_v21 = vld [vmem:[#allocation2 + $0x3] ss:$0 sm:$0xff] }
  0xbd   : > { %v139_v14 = vxor.u32 2147483648, %v138_v13  ;;  %v149_v18 = vxor.u32 2147483648, %v148_v16  ;;  %v159_v23 = vxor.u32 2147483648, %v158_v21  ;;  %v168_v26 = vld [vmem:[#allocation2 + $0x4] ss:$0 sm:$0xff] }
  0xbe   : > { %v169_v28 = vxor.u32 2147483648, %v168_v26  ;;  %v178_v31 = vld [vmem:[#allocation2 + $0x5] ss:$0 sm:$0xff]  ;;  %v188_v36 = vld [vmem:[#allocation2 + $0x6] ss:$0 sm:$0xff] }
  0xbf   : > { %v143_v15 = vmul.f32 %v139_v14, %v136_v12  ;;  %v179_v33 = vxor.u32 2147483648, %v178_v31  ;;  %v189_v38 = vxor.u32 2147483648, %v188_v36  ;;  %v198_v41 = vld [vmem:[#allocation2 + $0x7] ss:$0 sm:$0xff] }
  0xc0   : > { %v199_v43 = vxor.u32 2147483648, %v198_v41 }
  0xc1   : > { %144 = vadd.xlane.f32.xlu0 %v143_v15 }
 0x14a   : > { %v145_v17 = vpop.xlane.xlu0 %144 }
 0x14b   : > { %v146_v19 = vsel %vm142_vm6, %v145_v17, %v136_v12 }
 0x14c   : > { %v153_v20 = vmul.f32 %v149_v18, %v146_v19 }
 0x14e   : > { %154 = vadd.xlane.f32.xlu1 %v153_v20 }
 0x1d7   : > { %v155_v22 = vpop.xlane.xlu1 %154 }
 0x1d8   : > { %v156_v24 = vsel %vm152_vm7, %v155_v22, %v146_v19 }
 0x1d9   : > { %v163_v25 = vmul.f32 %v159_v23, %v156_v24 }
 0x1db   : > { %164 = vadd.xlane.f32.xlu1 %v163_v25 }
 0x264   : > { %v165_v27 = vpop.xlane.xlu1 %164 }
 0x265   : > { %v166_v29 = vsel %vm162_vm8, %v165_v27, %v156_v24 }
 0x266   : > { %v173_v30 = vmul.f32 %v169_v28, %v166_v29 }
 0x268   : > { %174 = vadd.xlane.f32.xlu0 %v173_v30 }
 0x2f1   : > { %v175_v32 = vpop.xlane.xlu0 %174 }
 0x2f2   : > { %v176_v34 = vsel %vm172_vm9, %v175_v32, %v166_v29 }
 0x2f3   : > { %v183_v35 = vmul.f32 %v179_v33, %v176_v34 }
 0x2f5   : > { %184 = vadd.xlane.f32.xlu1 %v183_v35 }
 0x37e   : > { %v185_v37 = vpop.xlane.xlu1 %184 }
 0x37f   : > { %v186_v39 = vsel %vm182_vm10, %v185_v37, %v176_v34 }
 0x380   : > { %v193_v40 = vmul.f32 %v189_v38, %v186_v39 }
 0x382   : > { %194 = vadd.xlane.f32.xlu0 %v193_v40 }
 0x40b   : > { %v195_v42 = vpop.xlane.xlu0 %194 }
 0x40c   : > { %v196_v44 = vsel %vm192_vm11, %v195_v42, %v186_v39 }
 0x40d   : > { %v203_v45 = vmul.f32 %v199_v43, %v196_v44 }
 0x40f   : > { %204 = vadd.xlane.f32.xlu1 %v203_v45 }
 0x498   : > { %v205_v46 = vpop.xlane.xlu1 %204 }
 0x499   : > { %v206_v47 = vsel %vm202_vm12, %v205_v46, %v196_v44 }
 0x49a   : > { %v208_v48 = vmul.f32 %v351_v8, %v206_v47 }
 0x49c   : > { %v210_v49 = vsel %vm209_vm13, %v206_v47, %v208_v48 }
 0x49d   : > { %250 = vst [vmem:[%s220_s24] sm:$0xff] %v210_v49 }
 0x49e PF: > { %s7_s8 = sadd.s32 1, %s374_s8   ;;  %s447_s6 = smov %s370_s7 }
 0x49f   : > { %p4_p5 = scmp.ge.s32.totalorder %s7_s8, 4   ;;  %s448_s7 = smov %s450_s10 }
 0x4a1   :  { %6 = sbr.rel (!%p4_p5) target bundleno = 2 (0x2), region = 125 }

// kernel: gp_vfe_forward.1
= control target key start
LH: loop header
LB: loop body
LE: loop exit
PB: predicated region body
PF: predicated region fallthrough
CT: control target
= control target key end

     0   :  { %s2379_s15 = smov 0   ;;  %s2381_s16 = smov 0   ;;  %s2564_s0 = inlined_call_operand.vmem [shape: f32[2,8,2048], index: 0, kind: input, shape index: {}]   ;;  %s2565_s1 = inlined_call_operand.vmem [shape: f32[2,3,2048], index: 1, kind: input, shape index: {}]   ;;  %s2566_s2 = inlined_call_operand.vmem [shape: f32[1,2,8,8], index: 2, kind: output, shape index: {0}]   ;;  %s2567_s3 = inlined_call_operand.vmem [shape: f32[1,2,8,3], index: 3, kind: output, shape index: {1}]   ;;  %s2568_s4 = inlined_call_operand.vmem [shape: f32[1,2,3,3], index: 4, kind: output, shape index: {2}]  }
   0x1   :  { %s2383_s17 = smov 0  }
   0x2 LB: > { %s30_s18 = sadd.s32 1, %s2347_s16  ;;  %p2284_p0 = scmp.ge.s32.totalorder %s2351_s17, 1  ;;  %s2351_s17 = sphi %s2383_s17, %s15_s17   ;;  %s2347_s16 = sphi %s2381_s16, %s2570_s16   ;;  %s2343_s15 = sphi %s2379_s15, %s2569_s15  }
   0x3   : > { %p32_p1 = scmp.ge.s32.totalorder %s30_s18, 2  ;;  %p224_p2 = scmp.lt.s32.totalorder %s2351_s17, 3 }
   0x5   : > { %s2572_s18 = smov (%p32_p1, %s30_s18), 0  ;;  %p225_p3 = pnand %p2284_p0, %p224_p2 }
   0x6   : > { %p286_p4 = scmp.lt.s32.totalorder (!%p225_p3), %s2343_s15, 1 }
   0x7   : > { %228 = sbr.rel (%p225_p3) target bundleno = 264 (0x108), region = 28 }
   0xc   : > { %s2574_s15 = smov (!%p286_p4, %s2343_s15), 1  ;;  %vm336_vm0 = vcmask 64512   ;;  %v2353_v32 = vmov 0.0   ;;  %vm338_vm1 = vcmask 23552   ;;  %vm340_vm2 = vcmask 18432  }
   0xd   : > { %s2294_s19 = sshll.u32 %s2574_s15, 7  ;;  %s2295_s23 = sshll.u32 %s2574_s15, 6 }
   0xe   : > { %s2403_s22 = scalar_lea.vmem %s2564_s0, %s2294_s19  ;;  %s2447_s26 = scalar_lea.vmem %s2565_s1, %s2295_s23 }
   0xf   : > { %v2406_v0 = vld [vmem:[%s2403_s22 + $0x8] sm:$0xff]  ;;  %v2409_v1 = vld [vmem:[%s2403_s22] sm:$0xff]  ;;  %v345_v2 = vld [vmem:[%s2403_s22 + $0x18] sm:$0xff]  ;;  %s2289_s27 = sshll.u32 %s2574_s15, 3  ;;  %s2291_s8 = sshll.u32 %s2574_s15, 2 }
  0x10   : > { %397 = vmatprep.subr.mxu0 %v2406_v0  ;;  %467 = vmatprep.subr.mxu1 %v345_v2  ;;  %v2414_v3 = vld [vmem:[%s2403_s22 + $0x10] sm:$0xff]  ;;  %v2417_v4 = vld [vmem:[%s2403_s22 + $0x28] sm:$0xff]  ;;  %v2422_v5 = vld [vmem:[%s2403_s22 + $0x38] sm:$0xff]  ;;  %s2527_s30 = scalar_lea.vmem %s2566_s2, %s2289_s27  ;;  %s2534_s7 = scalar_lea.vmem %s2567_s3, %s2289_s27 }
  0x11   : > { %398 = vmatpush1.xpose.msra.mxu0 %v2409_v1  ;;  %468 = vmatpush1.xpose.msra.mxu1 %v2414_v3  ;;  %v2426_v6 = vld [vmem:[%s2403_s22 + $0x20] sm:$0xff]  ;;  %v2429_v7 = vld [vmem:[%s2403_s22 + $0x30] sm:$0xff]  ;;  %v2437_v8 = vld [vmem:[%s2403_s22 + $0x48] sm:$0xff]  ;;  %337 = vst.msk [vmem:[%s2527_s30] sm:$0xff] %vm336_vm0, %v2353_v32  ;;  %s2542_s11 = scalar_lea.vmem %s2568_s4, %s2291_s8 }
  0x12   : > { %431 = vmatprep.mubr.f32.mxu0 %v2406_v0  ;;  %501 = vmatprep.mubr.f32.mxu1 %v345_v2  ;;  %v2440_v9 = vld [vmem:[%s2403_s22 + $0x58] sm:$0xff]  ;;  %v2452_v10 = vld [vmem:[%s2403_s22 + $0x40] sm:$0xff]  ;;  %v2455_v11 = vld [vmem:[%s2403_s22 + $0x50] sm:$0xff]  ;;  %339 = vst.msk [vmem:[%s2534_s7] sm:$0xff] %vm338_vm1, %v2353_v32 }
  0x13   : > { %537 = vmatprep.subr.mxu0 %v2417_v4  ;;  %607 = vmatprep.subr.mxu1 %v2422_v5  ;;  %v2460_v12 = vld [vmem:[%s2403_s22 + $0x68] sm:$0xff]  ;;  %v357_v13 = vld [vmem:[%s2403_s22 + $0x78] sm:$0xff]  ;;  %v2466_v14 = vld [vmem:[%s2447_s26] sm:$0x77]  ;;  %341 = vst.msk [vmem:[%s2542_s11] sm:$0x7] %vm340_vm2, %v2353_v32 }
  0x14   : > { %432 = vmatmul.mubr.f32.vlgmr.msra.gmra.mxu0 %v2409_v1  ;;  %502 = vmatmul.mubr.f32.vlgmr.msra.gmra.mxu1 %v2414_v3  ;;  %v2469_v15 = vld [vmem:[%s2447_s26 + $0x8] sm:$0x77]  ;;  %v354_v16 = vld [vmem:[%s2403_s22 + $0x60] sm:$0xff]  ;;  %v356_v17 = vld [vmem:[%s2403_s22 + $0x70] sm:$0xff]  ;;  %v939_v18 = vcombine.high %v2466_v14, %v2466_v14 }
  0x15   : > { %538 = vmatpush1.xpose.msra.mxu0 %v2426_v6  ;;  %608 = vmatpush1.xpose.msra.mxu1 %v2429_v7  ;;  %v940_v19 = vcombine.high %v2469_v15, %v2469_v15  ;;  %v2485_v20 = vld [vmem:[%s2447_s26 + $0x10] sm:$0x77]  ;;  %v2488_v21 = vld [vmem:[%s2447_s26 + $0x18] sm:$0x77]  ;;  %v362_v24 = vld [vmem:[%s2447_s26 + $0x20] sm:$0x77] }
  0x16   : > { %571 = vmatprep.mubr.f32.mxu0 %v2417_v4  ;;  %641 = vmatprep.mubr.f32.mxu1 %v2422_v5  ;;  %v941_v22 = vcombine.high %v2485_v20, %v2485_v20  ;;  %v942_v23 = vcombine.high %v2488_v21, %v2488_v21  ;;  %v363_v25 = vld [vmem:[%s2447_s26 + $0x28] sm:$0x77]  ;;  %v943_v26 = vcombine.high %v362_v24, %v362_v24  ;;  %v364_v28 = vld [vmem:[%s2447_s26 + $0x30] sm:$0x77]  ;;  %v365_v29 = vld [vmem:[%s2447_s26 + $0x38] sm:$0x77] }
  0x17   : > { %677 = vmatprep.subr.mxu0 %v2437_v8  ;;  %747 = vmatprep.subr.mxu1 %v2440_v9  ;;  %v944_v27 = vcombine.high %v363_v25, %v363_v25  ;;  %v945_v30 = vcombine.high %v364_v28, %v364_v28  ;;  %v946_v31 = vcombine.high %v365_v29, %v365_v29 }
  0x18   : > { %572 = vmatmul.mubr.f32.vlgmr.msra.gmra.mxu0 %v2426_v6  ;;  %642 = vmatmul.mubr.f32.vlgmr.msra.gmra.mxu1 %v2429_v7  ;;  %v366_v53 = vld [vmem:[%s2527_s30] sm:$0xff] }
  0x19   : > { %678 = vmatpush1.xpose.msra.mxu0 %v2452_v10  ;;  %748 = vmatpush1.xpose.msra.mxu1 %v2455_v11 }
  0x1a   : > { %711 = vmatprep.mubr.f32.mxu0 %v2437_v8  ;;  %781 = vmatprep.mubr.f32.mxu1 %v2440_v9 }
  0x1b   : > { %817 = vmatprep.subr.mxu0 %v2460_v12  ;;  %887 = vmatprep.subr.mxu1 %v357_v13 }
  0x1c   : > { %712 = vmatmul.mubr.f32.vlgmr.msra.gmra.mxu0 %v2452_v10  ;;  %782 = vmatmul.mubr.f32.vlgmr.msra.gmra.mxu1 %v2455_v11 }
  0x1d   : > { %818 = vmatpush1.xpose.msra.mxu0 %v354_v16  ;;  %888 = vmatpush1.xpose.msra.mxu1 %v356_v17 }
  0x1e   : > { %851 = vmatprep.mubr.f32.mxu0 %v2460_v12  ;;  %921 = vmatprep.mubr.f32.mxu1 %v357_v13 }
  0x1f   : > { %985 = vmatprep.subr.mxu0 %v939_v18  ;;  %1055 = vmatprep.subr.mxu1 %v940_v19 }
  0x20   : > { %852 = vmatmul.mubr.f32.vlgmr.msra.gmra.mxu0 %v354_v16  ;;  %922 = vmatmul.mubr.f32.vlgmr.msra.gmra.mxu1 %v356_v17 }
  0x21   : > { %986 = vmatpush1.xpose.msra.mxu0 %v2466_v14  ;;  %1056 = vmatpush1.xpose.msra.mxu1 %v2469_v15 }
  0x22   : > { %1019 = vmatprep.mubr.f32.mxu0 %v2406_v0  ;;  %1089 = vmatprep.mubr.f32.mxu1 %v345_v2 }
  0x23   : > { %1125 = vmatprep.subr.mxu0 %v941_v22  ;;  %1195 = vmatprep.subr.mxu1 %v942_v23 }
  0x24   : > { %1020 = vmatmul.mubr.f32.vlgmr.msra.gmra.mxu0 %v2409_v1  ;;  %1090 = vmatmul.mubr.f32.vlgmr.msra.gmra.mxu1 %v2414_v3 }
  0x25   : > { %1126 = vmatpush1.xpose.msra.mxu0 %v2485_v20  ;;  %1196 = vmatpush1.xpose.msra.mxu1 %v2488_v21 }
  0x26   : > { %1159 = vmatprep.mubr.f32.mxu0 %v2417_v4  ;;  %1229 = vmatprep.mubr.f32.mxu1 %v2422_v5 }
  0x27   : > { %1265 = vmatprep.subr.mxu0 %v943_v26  ;;  %1335 = vmatprep.subr.mxu1 %v944_v27 }
  0x28   : > { %1160 = vmatmul.mubr.f32.vlgmr.msra.gmra.mxu0 %v2426_v6  ;;  %1230 = vmatmul.mubr.f32.vlgmr.msra.gmra.mxu1 %v2429_v7 }
  0x29   : > { %1266 = vmatpush1.xpose.msra.mxu0 %v362_v24  ;;  %1336 = vmatpush1.xpose.msra.mxu1 %v363_v25 }
  0x2a   : > { %1299 = vmatprep.mubr.f32.mxu0 %v2437_v8  ;;  %1369 = vmatprep.mubr.f32.mxu1 %v2440_v9 }
  0x2b   : > { %1405 = vmatprep.subr.mxu0 %v945_v30  ;;  %1475 = vmatprep.subr.mxu1 %v946_v31 }
  0x2c   : > { %1300 = vmatmul.mubr.f32.vlgmr.msra.gmra.mxu0 %v2452_v10  ;;  %1370 = vmatmul.mubr.f32.vlgmr.msra.gmra.mxu1 %v2455_v11 }
  0x2d   : > { %1406 = vmatpush1.xpose.msra.mxu0 %v364_v28  ;;  %1476 = vmatpush1.xpose.msra.mxu1 %v365_v29 }
  0x2e   : > { %1439 = vmatprep.mubr.f32.mxu0 %v2460_v12  ;;  %1509 = vmatprep.mubr.f32.mxu1 %v357_v13 }
  0x2f   : > { %1549 = vmatprep.subr.mxu0 %v939_v18  ;;  %1619 = vmatprep.subr.mxu1 %v940_v19 }
  0x30   : > { %1440 = vmatmul.mubr.f32.vlgmr.msra.gmra.mxu0 %v354_v16  ;;  %1510 = vmatmul.mubr.f32.vlgmr.msra.gmra.mxu1 %v356_v17 }
  0x31   : > { %1550 = vmatpush1.xpose.msra.mxu0 %v2466_v14  ;;  %1620 = vmatpush1.xpose.msra.mxu1 %v2469_v15 }
  0x32   : > { %1583 = vmatprep.mubr.f32.mxu0 %v939_v18  ;;  %1653 = vmatprep.mubr.f32.mxu1 %v940_v19 }
  0x33   : > { %1689 = vmatprep.subr.mxu0 %v941_v22  ;;  %1759 = vmatprep.subr.mxu1 %v942_v23 }
  0x34   : > { %1584 = vmatmul.mubr.f32.vlgmr.msra.gmra.mxu0 %v2466_v14  ;;  %1654 = vmatmul.mubr.f32.vlgmr.msra.gmra.mxu1 %v2469_v15  ;;  %v930_v14 = vld [vmem:[%s2534_s7] sm:$0xff] }
  0x35   : > { %1690 = vmatpush1.xpose.msra.mxu0 %v2485_v20  ;;  %1760 = vmatpush1.xpose.msra.mxu1 %v2488_v21 }
  0x36   : > { %1723 = vmatprep.mubr.f32.mxu0 %v941_v22  ;;  %1793 = vmatprep.mubr.f32.mxu1 %v942_v23 }
  0x37   : > { %1829 = vmatprep.subr.mxu0 %v943_v26  ;;  %1899 = vmatprep.subr.mxu1 %v944_v27 }
  0x38   : > { %1724 = vmatmul.mubr.f32.vlgmr.msra.gmra.mxu0 %v2485_v20  ;;  %1794 = vmatmul.mubr.f32.vlgmr.msra.gmra.mxu1 %v2488_v21 }
  0x39   : > { %1830 = vmatpush1.xpose.msra.mxu0 %v362_v24  ;;  %1900 = vmatpush1.xpose.msra.mxu1 %v363_v25 }
  0x3a   : > { %1863 = vmatprep.mubr.f32.mxu0 %v943_v26  ;;  %1933 = vmatprep.mubr.f32.mxu1 %v944_v27 }
  0x3b   : > { %1969 = vmatprep.subr.mxu0 %v945_v30  ;;  %2039 = vmatprep.subr.mxu1 %v946_v31 }
  0x3c   : > { %1864 = vmatmul.mubr.f32.vlgmr.msra.gmra.mxu0 %v362_v24  ;;  %1934 = vmatmul.mubr.f32.vlgmr.msra.gmra.mxu1 %v363_v25 }
  0x3d   : > { %1970 = vmatpush1.xpose.msra.mxu0 %v364_v28  ;;  %2040 = vmatpush1.xpose.msra.mxu1 %v365_v29 }
  0x3e   : > { %2003 = vmatprep.mubr.f32.mxu0 %v945_v30  ;;  %2073 = vmatprep.mubr.f32.mxu1 %v946_v31 }
  0x40   : > { %2004 = vmatmul.mubr.f32.vlgmr.msra.gmra.mxu0 %v364_v28  ;;  %2074 = vmatmul.mubr.f32.vlgmr.msra.gmra.mxu1 %v365_v29 }
  0xd4   : > { %v433_v33 = vpop.f32.mrf.mxu0  ;;  %v503_v34 = vpop.f32.mrf.mxu1 }
  0xd5   : > { %v504_v37 = vadd.f32 %v503_v34, %v433_v33 }
  0xd6   : > { %v435_v35 = vpop.f32.mrf.mxu0  ;;  %v505_v36 = vpop.f32.mrf.mxu1 }
  0xd8   : > { %v573_v38 = vpop.f32.mrf.mxu0  ;;  %v643_v39 = vpop.f32.mrf.mxu1 }
  0xd9   : > { %v574_v40 = vadd.f32 %v573_v38, %v504_v37 }
  0xda   : > { %v575_v41 = vpop.f32.mrf.mxu0  ;;  %v645_v42 = vpop.f32.mrf.mxu1 }
  0xdb   : > { %v644_v43 = vadd.f32 %v643_v39, %v574_v40  ;;  %v1518_v39 = vld [vmem:[%s2542_s11] sm:$0x7] }
  0xdc   : > { %v713_v44 = vpop.f32.mrf.mxu0  ;;  %v783_v45 = vpop.f32.mrf.mxu1 }
  0xdd   : > { %v714_v46 = vadd.f32 %v713_v44, %v644_v43 }
  0xde   : > { %v715_v47 = vpop.f32.mrf.mxu0  ;;  %v785_v48 = vpop.f32.mrf.mxu1 }
  0xdf   : > { %v784_v49 = vadd.f32 %v783_v45, %v714_v46 }
  0xe0   : > { %v853_v50 = vpop.f32.mrf.mxu0  ;;  %v923_v51 = vpop.f32.mrf.mxu1 }
  0xe1   : > { %v854_v52 = vadd.f32 %v853_v50, %v784_v49 }
  0xe2   : > { %v855_v54 = vpop.f32.mrf.mxu0  ;;  %v925_v55 = vpop.f32.mrf.mxu1 }
  0xe3   : > { %v924_v56 = vadd.f32 %v923_v51, %v854_v52 }
  0xe4   : > { %v1021_v57 = vpop.f32.mrf.mxu0  ;;  %v1091_v58 = vpop.f32.mrf.mxu1 }
  0xe5   : > { %v927_v59 = vadd.f32 %v924_v56, %v366_v53  ;;  %v1092_v62 = vadd.f32 %v1091_v58, %v1021_v57 }
  0xe6   : > { %v1023_v60 = vpop.f32.mrf.mxu0  ;;  %v1093_v61 = vpop.f32.mrf.mxu1 }
  0xe7   : > { %929 = vst.msk [vmem:[%s2527_s30] sm:$0xff] %vm336_vm0, %v927_v59 }
  0xe8   : > { %v1161_v63 = vpop.f32.mrf.mxu0  ;;  %v1231_v0 = vpop.f32.mrf.mxu1 }
  0xe9   : > { %v1162_v1 = vadd.f32 %v1161_v63, %v1092_v62 }
  0xea   : > { %v1163_v2 = vpop.f32.mrf.mxu0  ;;  %v1233_v3 = vpop.f32.mrf.mxu1 }
  0xeb   : > { %v1232_v4 = vadd.f32 %v1231_v0, %v1162_v1 }
  0xec   : > { %v1301_v5 = vpop.f32.mrf.mxu0  ;;  %v1371_v6 = vpop.f32.mrf.mxu1 }
  0xed   : > { %v1302_v7 = vadd.f32 %v1301_v5, %v1232_v4 }
  0xee   : > { %v1303_v8 = vpop.f32.mrf.mxu0  ;;  %v1373_v9 = vpop.f32.mrf.mxu1 }
  0xef   : > { %v1372_v10 = vadd.f32 %v1371_v6, %v1302_v7 }
  0xf0   : > { %v1441_v11 = vpop.f32.mrf.mxu0  ;;  %v1511_v12 = vpop.f32.mrf.mxu1 }
  0xf1   : > { %v1442_v13 = vadd.f32 %v1441_v11, %v1372_v10 }
  0xf2   : > { %v1443_v15 = vpop.f32.mrf.mxu0  ;;  %v1513_v16 = vpop.f32.mrf.mxu1 }
  0xf3   : > { %v1512_v17 = vadd.f32 %v1511_v12, %v1442_v13 }
  0xf4   : > { %v1585_v18 = vpop.f32.mrf.mxu0  ;;  %v1655_v19 = vpop.f32.mrf.mxu1 }
  0xf5   : > { %v1515_v20 = vadd.f32 %v1512_v17, %v930_v14  ;;  %v1656_v23 = vadd.f32 %v1655_v19, %v1585_v18 }
  0xf6   : > { %v1587_v21 = vpop.f32.mrf.mxu0  ;;  %v1657_v22 = vpop.f32.mrf.mxu1 }
  0xf7   : > { %1517 = vst.msk [vmem:[%s2534_s7] sm:$0xff] %vm338_vm1, %v1515_v20 }
  0xf8   : > { %v1725_v24 = vpop.f32.mrf.mxu0  ;;  %v1795_v25 = vpop.f32.mrf.mxu1 }
  0xf9   : > { %v1726_v26 = vadd.f32 %v1725_v24, %v1656_v23 }
  0xfa   : > { %v1727_v27 = vpop.f32.mrf.mxu0  ;;  %v1797_v28 = vpop.f32.mrf.mxu1 }
  0xfb   : > { %v1796_v29 = vadd.f32 %v1795_v25, %v1726_v26 }
  0xfc   : > { %v1865_v30 = vpop.f32.mrf.mxu0  ;;  %v1935_v31 = vpop.f32.mrf.mxu1 }
  0xfd   : > { %v1866_v32 = vadd.f32 %v1865_v30, %v1796_v29 }
  0xfe   : > { %v1867_v33 = vpop.f32.mrf.mxu0  ;;  %v1937_v34 = vpop.f32.mrf.mxu1 }
  0xff   : > { %v1936_v35 = vadd.f32 %v1935_v31, %v1866_v32 }
 0x100   : > { %v2005_v36 = vpop.f32.mrf.mxu0  ;;  %v2075_v37 = vpop.f32.mrf.mxu1 }
 0x101   : > { %v2006_v38 = vadd.f32 %v2005_v36, %v1936_v35 }
 0x102   : > { %v2007_v40 = vpop.f32.mrf.mxu0  ;;  %v2077_v41 = vpop.f32.mrf.mxu1 }
 0x103   : > { %v2076_v42 = vadd.f32 %v2075_v37, %v2006_v38 }
 0x105   : > { %v2079_v43 = vadd.f32 %v2076_v42, %v1518_v39 }
 0x107   : > { %2081 = vst.msk [vmem:[%s2542_s11] sm:$0x7] %vm340_vm2, %v2079_v43 }
 0x108 PF: > { %s15_s17 = sadd.s32 1, %s2351_s17   ;;  %s2569_s15 = smov %s2347_s16 }
 0x109   : > { %p12_p5 = scmp.ge.s32.totalorder %s15_s17, 4   ;;  %s2570_s16 = smov %s2572_s18 }
 0x10b   :  { %14 = sbr.rel (!%p12_p5) target bundleno = 2 (0x2), region = 89 }

</bundles_post_ra>
